<compile_context>
chip_gen: v7x
topology: tpu7x:2x2x1
jax: 0.10.0
libtpu: 0.0.40
codegen_flags: <defaults>
</compile_context>

<pallas_src>
import functools

import jax
import jax.numpy as jnp
from jax.experimental import pallas as pl
from jax.experimental.pallas import tpu as pltpu

EPS = 1e-5  # nn.LayerNorm default

# Scoped VMEM requested from the compiler: above the 16/32 MiB defaults but
# inside every generation's physical VMEM (v5e/v6e 128 MiB, v7x 64 MiB/TC).
VMEM_LIMIT_BYTES = 48 << 20
# Working-set budget used for tile sizing; ~2x headroom under the scoped
# limit for compiler temporaries, params and semaphores.
TILE_WORKING_SET_BYTES = 24 << 20


def _layernorm_mod_kernel(x_ref, g_ref, b_ref, o_ref, *, d_actual, d_padded):
    # x_ref / o_ref: (tT, Dp); g_ref / b_ref: (1, Dp) float32 (pre-folded).
    x = x_ref[...].astype(jnp.float32)
    inv_d = jnp.float32(1.0 / d_actual)

    # Two-pass centered statistics (numerically robust vs E[x^2] - mean^2).
    mean = jnp.sum(x, axis=-1, keepdims=True) * inv_d
    xc = x - mean
    if d_padded != d_actual:
        # Padded lanes hold zeros in x; after centering they hold -mean, so
        # mask them out of the variance (and of the output, which becomes 0
        # there since g_eff/b_eff are zero-padded).
        lane = jax.lax.broadcasted_iota(jnp.int32, x.shape, dimension=x.ndim - 1)
        xc = jnp.where(lane < d_actual, xc, 0.0)
    var = jnp.sum(xc * xc, axis=-1, keepdims=True) * inv_d
    xn = xc * jax.lax.rsqrt(var + EPS)

    # y = LayerNorm(x)*(1+scale) + shift, with the affine+modulation already
    # folded into g_eff / b_eff in the wrapper.
    o_ref[...] = (xn * g_ref[...] + b_ref[...]).astype(o_ref.dtype)


def _choose_block_t(T, d_padded, itemsize):
    # Live VMEM per tile row (bytes):
    #   double-buffered input block   : 2 * Dp * itemsize
    #   double-buffered output block  : 2 * Dp * itemsize
    #   ~3 tile-sized fp32 temporaries: 3 * Dp * 4   (x_f32, centered, result)
    per_row = d_padded * (4 * itemsize + 3 * 4)
    tT = TILE_WORKING_SET_BYTES // max(1, per_row)
    return int(max(8, min(T, tT, 2048)))


def layernorm_mod(x, gamma, beta, scale, shift, *, block_t=None):
    """x: (B, T, D); gamma/beta: (D,); scale/shift: (B, 1, D)."""
    B, T, D = x.shape
    itemsize = x.dtype.itemsize

    # Lane-dense last dim: pad D to a multiple of 128.  No-op for the common
    # transformer widths; for small/odd D the pad copy is cheap and avoids
    # masked partial stores on every tile.
    Dp = ((D + 127) // 128) * 128

    # Sublane packing per dtype: 8 rows (f32), 16 (bf16), 32 (int8/fp8).
    sub = max(8, 32 // itemsize)

    if block_t is None:
        block_t = _choose_block_t(T, Dp, itemsize)
    tT = min(int(block_t), T)

    # Keep enough total grid steps (~8) for v7x's two TensorCores plus
    # double buffering, when T is large enough to split.
    MIN_GRID_STEPS = 8
    t_tiles_needed = -(-MIN_GRID_STEPS // B)  # ceil
    if t_tiles_needed > 1 and T > sub:
        cap = -(-T // t_tiles_needed)                      # ceil(T / tiles)
        cap = ((cap + sub - 1) // sub) * sub               # round up to sublane pack
        tT = min(tT, max(sub, cap))

    if tT < T:
        # Partial tile: keep the sublane dim a full packing multiple.
        tT = min(T, max(sub, (tT // sub) * sub))

    grid = (B, pl.cdiv(T, tT))

    # Fold modulation + LayerNorm affine once in the wrapper (O(B*D) vs the
    # kernel's O(B*T*D)):  y = xn*[gamma*(1+scale)] + [beta*(1+scale)+shift]
    f32 = jnp.float32
    one_plus_scale = 1.0 + scale.astype(f32)                        # (B,1,D)
    g_eff = gamma.astype(f32).reshape(1, 1, D) * one_plus_scale     # (B,1,D)
    b_eff = (beta.astype(f32).reshape(1, 1, D) * one_plus_scale
             + shift.astype(f32))                                   # (B,1,D)

    x_in = x
    if Dp != D:
        pad = ((0, 0), (0, 0), (0, Dp - D))
        x_in = jnp.pad(x, pad)          # zero pad -> correct mean, masked var
        g_eff = jnp.pad(g_eff, pad)     # zero pad -> padded output lanes = 0
        b_eff = jnp.pad(b_eff, pad)

    kernel = functools.partial(_layernorm_mod_kernel, d_actual=D, d_padded=Dp)

    out = pl.pallas_call(
        kernel,
        out_shape=jax.ShapeDtypeStruct((B, T, Dp), x.dtype),
        grid_spec=pltpu.PrefetchScalarGridSpec(
            num_scalar_prefetch=0,
            grid=grid,
            in_specs=[
                pl.BlockSpec((pl.Squeezed(), tT, Dp), lambda b, t: (b, t, 0)),  # x
                pl.BlockSpec((pl.Squeezed(), 1, Dp), lambda b, t: (b, 0, 0)),   # g_eff
                pl.BlockSpec((pl.Squeezed(), 1, Dp), lambda b, t: (b, 0, 0)),   # b_eff
            ],
            out_specs=pl.BlockSpec((pl.Squeezed(), tT, Dp), lambda b, t: (b, t, 0)),
        ),
        compiler_params=pltpu.CompilerParams(
            # Both axes independent -> megacore sharding on v7x; harmless on
            # single-TC v5e/v6e.
            dimension_semantics=("parallel", "parallel"),
            vmem_limit_bytes=VMEM_LIMIT_BYTES,
        ),
    )(x_in, g_eff, b_eff)

    if Dp != D:
        out = out[..., :D]
    return out


def reference(x, gamma, beta, scale, shift):
    xf = x.astype(jnp.float32)
    mean = jnp.mean(xf, axis=-1, keepdims=True)
    var = jnp.mean((xf - mean) ** 2, axis=-1, keepdims=True)
    xn = (xf - mean) * jax.lax.rsqrt(var + EPS)
    y = xn * gamma.astype(jnp.float32) + beta.astype(jnp.float32)
    y = y * (1.0 + scale.astype(jnp.float32)) + shift.astype(jnp.float32)
    return y.astype(x.dtype)


def _run_case(key, B, T, D, dtype=jnp.float32, block_t=None, atol=1e-5, rtol=1e-5):
    kx, ks, kh = jax.random.split(key, 3)
    x = jax.random.normal(kx, (B, T, D), dtype=jnp.float32).astype(dtype)
    scale = (jax.random.normal(ks, (B, 1, D), dtype=jnp.float32) * 0.1).astype(dtype)
    shift = (jax.random.normal(kh, (B, 1, D), dtype=jnp.float32) * 0.1).astype(dtype)
    # nn.LayerNorm(dim) deterministic init: weight=1, bias=0
    gamma = jnp.ones((D,), dtype=jnp.float32)
    beta = jnp.zeros((D,), dtype=jnp.float32)

    out = layernorm_mod(x, gamma, beta, scale, shift, block_t=block_t)
    out = jax.block_until_ready(out)
    ref = reference(x, gamma, beta, scale, shift)
    assert jnp.allclose(out.astype(jnp.float32), ref.astype(jnp.float32),
                        atol=atol, rtol=rtol), (
        f"mismatch vs reference for B={B}, T={T}, D={D}, dtype={dtype}")


if __name__ == "__main__":
    key = jax.random.PRNGKey(0)
    k1, k2, k3, k4 = jax.random.split(key, 4)

    # Small demo shape consistent with the module: exercises the D<128 pad +
    # masked-variance path (single T tile).
    _run_case(k1, B=2, T=8, D=32)

    # Lane-dense D with a forced small T tile -> partial last block path.
    _run_case(k2, B=2, T=12, D=128, block_t=8)

    # Auto tiling + minimum-grid-steps cap (tT shrinks so grid=(1,8)).
    _run_case(k3, B=1, T=256, D=128)

    # bf16 path: dtype-aware sublane rounding (multiples of 16).
    _run_case(k4, B=2, T=40, D=128, dtype=jnp.bfloat16, atol=2e-2, rtol=2e-2)

    print("KERNEL_OK")
</pallas_src>

<mosaic_0001>
module attributes {stable_mosaic.version = 11 : i64} {
  func.func @_layernorm_mod_kernel(%arg0: i32, %arg1: i32, %arg2: memref<1x8x128xf32, #tpu.memory_space<vmem>>, %arg3: memref<1x1x128xf32, #tpu.memory_space<vmem>>, %arg4: memref<1x1x128xf32, #tpu.memory_space<vmem>>, %arg5: memref<1x8x128xf32, #tpu.memory_space<vmem>>) attributes {dimension_semantics = [#tpu.dimension_semantics<parallel>, #tpu.dimension_semantics<parallel>], iteration_bounds = array<i64: 2, 1>, scalar_prefetch = 0 : i64, scratch_operands = 0 : i64, tpu.core_type = #tpu.core_type<tc>, window_params = [{transform_indices = @transform_0, window_bounds = array<i64: 1, 8, 128>}, {transform_indices = @transform_1, window_bounds = array<i64: 1, 1, 128>}, {transform_indices = @transform_2, window_bounds = array<i64: 1, 1, 128>}, {transform_indices = @transform_3, window_bounds = array<i64: 1, 8, 128>}]} {
    %c0 = arith.constant 0 : index
    %c0_0 = arith.constant 0 : index
    %c0_1 = arith.constant 0 : index
    %0 = vector.load %arg2[%c0, %c0_0, %c0_1] : memref<1x8x128xf32, #tpu.memory_space<vmem>>, vector<1x8x128xf32>
    %1 = vector.shape_cast %0 : vector<1x8x128xf32> to vector<8x128xf32>
    %cst = arith.constant dense<0.000000e+00> : vector<8xf32>
    %2 = vector.multi_reduction <add>, %1, %cst [1] : vector<8x128xf32> to vector<8xf32>
    %3 = vector.shape_cast %2 : vector<8xf32> to vector<8x1xf32>
    %cst_2 = arith.constant 3.125000e-02 : f32
    %4 = vector.broadcast %cst_2 : f32 to vector<8x1xf32>
    %5 = arith.mulf %3, %4 : vector<8x1xf32>
    %6 = vector.broadcast %5 : vector<8x1xf32> to vector<8x128xf32>
    %7 = arith.subf %1, %6 : vector<8x128xf32>
    %8 = tpu.iota {dimensions = array<i32: 1>} : vector<8x128xi32>
    %c32_i32 = arith.constant 32 : i32
    %9 = vector.broadcast %c32_i32 : i32 to vector<8x128xi32>
    %10 = arith.cmpi slt, %8, %9 : vector<8x128xi32>
    %cst_3 = arith.constant 0.000000e+00 : f32
    %11 = vector.broadcast %cst_3 : f32 to vector<8x128xf32>
    %12 = arith.select %10, %7, %11 : vector<8x128xi1>, vector<8x128xf32>
    %13 = arith.mulf %12, %12 : vector<8x128xf32>
    %cst_4 = arith.constant dense<0.000000e+00> : vector<8xf32>
    %14 = vector.multi_reduction <add>, %13, %cst_4 [1] : vector<8x128xf32> to vector<8xf32>
    %15 = vector.shape_cast %14 : vector<8xf32> to vector<8x1xf32>
    %cst_5 = arith.constant 3.125000e-02 : f32
    %16 = vector.broadcast %cst_5 : f32 to vector<8x1xf32>
    %17 = arith.mulf %15, %16 : vector<8x1xf32>
    %cst_6 = arith.constant 9.99999974E-6 : f32
    %18 = vector.broadcast %cst_6 : f32 to vector<8x1xf32>
    %19 = arith.addf %17, %18 : vector<8x1xf32>
    %20 = math.rsqrt %19 : vector<8x1xf32>
    %21 = vector.broadcast %20 : vector<8x1xf32> to vector<8x128xf32>
    %22 = arith.mulf %12, %21 : vector<8x128xf32>
    %c0_7 = arith.constant 0 : index
    %c0_8 = arith.constant 0 : index
    %c0_9 = arith.constant 0 : index
    %23 = vector.load %arg3[%c0_7, %c0_8, %c0_9] : memref<1x1x128xf32, #tpu.memory_space<vmem>>, vector<1x1x128xf32>
    %24 = vector.shape_cast %23 : vector<1x1x128xf32> to vector<1x128xf32>
    %25 = vector.broadcast %24 : vector<1x128xf32> to vector<8x128xf32>
    %26 = arith.mulf %22, %25 : vector<8x128xf32>
    %c0_10 = arith.constant 0 : index
    %c0_11 = arith.constant 0 : index
    %c0_12 = arith.constant 0 : index
    %27 = vector.load %arg4[%c0_10, %c0_11, %c0_12] : memref<1x1x128xf32, #tpu.memory_space<vmem>>, vector<1x1x128xf32>
    %28 = vector.shape_cast %27 : vector<1x1x128xf32> to vector<1x128xf32>
    %29 = vector.broadcast %28 : vector<1x128xf32> to vector<8x128xf32>
    %30 = arith.addf %26, %29 : vector<8x128xf32>
    %c0_13 = arith.constant 0 : index
    %c0_14 = arith.constant 0 : index
    %c0_15 = arith.constant 0 : index
    %31 = vector.load %arg5[%c0_13, %c0_14, %c0_15] : memref<1x8x128xf32, #tpu.memory_space<vmem>>, vector<1x8x128xf32>
    %32 = vector.shape_cast %31 : vector<1x8x128xf32> to vector<8x128xf32>
    %33 = vector.shape_cast %30 : vector<8x128xf32> to vector<1x8x128xf32>
    tpu.vector_store %arg5[%c0_13, %c0_14, %c0_15], %33 {strides = array<i32>} : memref<1x8x128xf32, #tpu.memory_space<vmem>>, vector<1x8x128xf32>,
    return
  }
  func.func @transform_0(%arg0: i32, %arg1: i32) -> (i32, i32, i32) {
    %c0_i32 = arith.constant 0 : i32
    %c0_i32_0 = arith.constant 0 : i32
    return %arg0, %arg1, %c0_i32 : i32, i32, i32
  }
  func.func @transform_1(%arg0: i32, %arg1: i32) -> (i32, i32, i32) {
    %c0_i32 = arith.constant 0 : i32
    %c0_i32_0 = arith.constant 0 : i32
    %c0_i32_1 = arith.constant 0 : i32
    return %arg0, %c0_i32, %c0_i32_0 : i32, i32, i32
  }
  func.func @transform_2(%arg0: i32, %arg1: i32) -> (i32, i32, i32) {
    %c0_i32 = arith.constant 0 : i32
    %c0_i32_0 = arith.constant 0 : i32
    %c0_i32_1 = arith.constant 0 : i32
    return %arg0, %c0_i32, %c0_i32_0 : i32, i32, i32
  }
  func.func @transform_3(%arg0: i32, %arg1: i32) -> (i32, i32, i32) {
    %c0_i32 = arith.constant 0 : i32
    %c0_i32_0 = arith.constant 0 : i32
    return %arg0, %arg1, %c0_i32 : i32, i32, i32
  }
}

</mosaic_0001>

<bundles_post_ra>
// kernel: tpu_custom_call.1
= control target key start
LH: loop header
LB: loop body
LE: loop exit
PB: predicated region body
PF: predicated region fallthrough
CT: control target
= control target key end

     0   :  { %8 = vsyncpa [#allocation3], 0  ;;  %s772_s0 = inlined_call_operand.hbm [shape: f32[2,8,128], index: 0, kind: input, shape index: {}]   ;;  %s773_s1 = inlined_call_operand.vmem [shape: f32[2,1,128], index: 1, kind: input, shape index: {}]   ;;  %s774_s2 = inlined_call_operand.vmem [shape: f32[2,1,128], index: 2, kind: input, shape index: {}]   ;;  %s775_s3 = inlined_call_operand.hbm [shape: f32[2,8,128], index: 3, kind: output, shape index: {}]  }
   0x1   :  { %10 = vsyncpa [#allocation3 + $0x1], 0 }
   0x2   :  { %11 = vsyncpa [#allocation4], 0 }
   0x3   :  { %13 = vsyncpa [#allocation4 + $0x1], 0  ;;  %s592_s12 = smov 0   ;;  %s594_s13 = smov 0  }
   0x4   :  { %s596_s14 = smov 0   ;;  %s598_s15 = smov 0  }
   0x5   :  { %s600_s16 = smov 0   ;;  %s602_s17 = smov 0  }
   0x6 LB: > { %s377_s18 = sadd.s32 4294967295, %s568_s17   ;;  %s378_s19 = sadd.s32 4294967294, %s568_s17   ;;  %s568_s17 = sphi %s602_s17, %s19_s17   ;;  %s564_s16 = sphi %s600_s16, %s791_s16   ;;  %s560_s15 = sphi %s598_s15, %s790_s15   ;;  %s556_s14 = sphi %s596_s14, %s789_s14   ;;  %s552_s13 = sphi %s594_s13, %s788_s13   ;;  %s548_s12 = sphi %s592_s12, %s787_s12  }
   0x7   : > { %s31_s20 = sadd.s32 1, %s564_s16  ;;  %s40_s21 = sadd.s32 1, %s556_s14 }
   0x8   : > { %p33_p0 = scmp.ge.s32.totalorder %s31_s20, 2  ;;  %p47_p1 = scmp.ne.s32.totalorder %s556_s14, %s552_s13 }
   0x9   : > { %p48_p2 = scmp.eq.s32.totalorder %s568_s17, 0  ;;  %p53_p3 = scmp.ne.s32.totalorder %s552_s13, %s548_s12 }
   0xa   : > { %s793_s20 = smov (%p33_p0, %s31_s20), 0  ;;  %p54_p5 = scmp.eq.s32.totalorder %s377_s18, 0 }
   0xb   : > { %p633_p4 = por %p48_p2, %p47_p1  ;;  %s35_s23 = ssub.s32 %s564_s16, %s793_s20 }
   0xc   : > { %p131_p6 = scmp.eq.s32.totalorder %s377_s18, 1  ;;  %p38_p7 = scmp.eq.s32.totalorder %s35_s23, 0 }
   0xd   : > { %p639_p8 = por %p54_p5, %p53_p3  ;;  %p137_p10 = scmp.eq.s32.totalorder %s378_s19, 1 }
   0xe   : > { %p643_p9 = por %p131_p6, %p47_p1  ;;  %p404_p13 = scmp.lt.s32.totalorder %s568_s17, 2 }
   0xf   : > { %s648_s26 = scalar_select %p38_p7, %s556_s14, %s40_s21  }
  0x10   : > { %s779_s25 = scalar_select %p643_p9, 1, 0 }
  0x11   : > { %p650_p11 = por %p137_p10, %p53_p3  ;;  %s157_s28 = sand.u32 1, %s556_s14  }
  0x12   : > { %s381_s29 = sshll.u32 %s157_s28, 3  ;;  %s382_s30 = sshll.u32 %s564_s16, 7 }
  0x13   : > { %s780_s27 = scalar_select %p650_p11, 1, 0 }
  0x14   : > { %s661_s6 = scalar_lea.hbm %s772_s0, %s382_s30  ;;  %s161_s7 = scalar_lea.vmem [#allocation2], %s381_s29 }
  0x15   : > { %s169_s8 = sshll.u32 %s161_s7, 4  ;;  %p667_p0 = pnand %p404_p13, %p633_p4  ;;  %s663_s8 = int_to_ptr.vmem [resolvable:$true] %s169_s8 }
  0x16   : > { %s158_s10 = scalar_lea.sflag [#allocation3], %s157_s28  ;;  %s456_s11 = scalar_lea.hbm %s661_s6, 128 }
  0x17   : > { %p457_p3 = scmp.ne.s32.totalorder %s661_s6, %s456_s11  ;;  %p458_p5 = pneg %p667_p0 }
  0x18   : > { %s461_s21 = scalar_lea.hbm %s772_s0, 256  ;;  %p462_p4 = scmp.lt.u32.totalorder %s661_s6, %s772_s0 }
  0x19   : > { %p459_p6 = pnand %p458_p5, %p457_p3  ;;  %p463_p10 = scmp.lt.u32.totalorder %s461_s21, %s456_s11 }
  0x1a   : > { %p465_p12 = scmp.lt.u32.totalorder %s456_s11, %s661_s6 }
  0x1b   : > { %p460_p7 = pneg %p459_p6  ;;  %p464_p13 = por %p463_p10, %p462_p4 }
  0x1d   : > { %p466_p1 = por %p465_p12, %p464_p13 }
  0x1f   : > { %p467_p2 = pnand %p466_p1, %p460_p7 }
  0x21   : > { %470 = shalt.err (!%p467_p2)
}
  0x22   : > { %s471_s28 = scalar_lea.vmem %s663_s8, 128  ;;  %s570_s29 = smov [#allocation2]  }
  0x23   : > { %p472_p3 = scmp.ne.s32.totalorder %s663_s8, %s471_s28  ;;  %s476_s30 = sshll.u32 %s570_s29, 4  ;;  %s477_s30 = int_to_ptr.vmem [resolvable:$false] %s476_s30 }
  0x24   : > { %s478_s4 = scalar_lea.vmem %s477_s30, 256  ;;  %p479_p9 = scmp.lt.s32.totalorder %s663_s8, %s477_s30 }
  0x25   : > { %p474_p6 = pnand %p472_p3, %p458_p5  ;;  %p480_p4 = scmp.lt.s32.totalorder %s478_s4, %s471_s28 }
  0x27   : > { %p475_p11 = pneg %p474_p6  ;;  %p481_p10 = por %p480_p4, %p479_p9 }
  0x29   : > { %p482_p12 = pnand %p481_p10, %p475_p11 }
  0x2b   : > { %485 = shalt.err (!%p482_p12)
}
  0x2c   : > { %399 = dma.hbm_to_vmem [thread:$0]  (!%p667_p0), %s661_s6, 128, %s663_s8, %s158_s10  }
  0x2d   : > { %p782_p1 = scmp.lt.s32.totalorder %s568_s17, 3  ;;  %p783_p2 = scmp.ge.s32.totalorder %s568_s17, 1 }
  0x2f   : > { %p187_p5 = pnand %p783_p2, %p782_p1 }
  0x30   : > { %s703_s5 = sand.u32 (!%p187_p5), 1, %s552_s13  }
  0x31   : > { %190 = sbr.rel (%p187_p5) target bundleno = 384 (0x180), region = 32  ;;  %s384_s7 = sshll.u32 (!%p187_p5), %s703_s5, 3 }
  0x32   : > { %s193_s11 = scalar_lea.sflag (!%p187_p5), [#allocation3], %s703_s5  ;;  %s196_s18 = scalar_lea.vmem (!%p187_p5), [#allocation2], %s384_s7 }
  0x38   : > { %539 = dma.done.wait (%p639_p8), %s193_s11, 128  }
  0x39   : > { %541 = vsyncadd (%p639_p8), %s193_s11, 4294967168  ;;  %v231_v0 = vld [vmem:[%s196_s18] sm:$0xff]  ;;  %v236_v1 = vlaneseq  ;;  %p225_p9 = scmp.lt.s32.totalorder %s560_s15, 1  ;;  %s389_s22 = sshll.u32 %s560_s15, 7 }
  0x3a   : > { %232 = vadd.xlane.f32.xlu0 %v231_v0  ;;  %s224_s23 = scalar_lea.vmem [#allocation5], %s384_s7  ;;  %s723_s4 = scalar_lea.hbm %s775_s3, %s389_s22 }
  0x3b   : > { %v237_v2 = vand.u32 127, %v236_v1  ;;  %s226_s24 = scalar_select %p225_p9, %s560_s15, 1 }
  0x3c   : > { %s279_s28 = sshll.u32 %s224_s23, 4  ;;  %s265_s11 = scalar_lea.sflag [#allocation4], %s703_s5  ;;  %s725_s28 = int_to_ptr.vmem [resolvable:$true] %s279_s28 }
  0x3d   : > { %vm238_vm0 = vcmp.lt.s32.totalorder %v237_v2, 32  ;;  %s227_s9 = scalar_lea.vmem %s773_s1, %s226_s24  ;;  %s230_s21 = scalar_lea.vmem %s774_s2, %s226_s24 }
  0x3e   : > { %v386_v12 = vld [vmem:[%s227_s9] ss:$0 sm:$0xff]  ;;  %s486_s18 = scalar_lea.vmem %s725_s28, 128  ;;  %p784_p11 = scmp.ne.s32.totalorder %s779_s25, 0 }
  0x3f   : > { %v387_v14 = vld [vmem:[%s230_s21] ss:$0 sm:$0xff]  ;;  %p487_p8 = scmp.ne.s32.totalorder %s725_s28, %s486_s18  ;;  %s571_s15 = smov [#allocation5]  }
  0x40   : > { %s490_s7 = sshll.u32 %s571_s15, 4  ;;  %s491_s7 = int_to_ptr.vmem [resolvable:$false] %s490_s7 }
  0x41   : > { %p488_p0 = pnand %p487_p8, %p784_p11  ;;  %s492_s24 = scalar_lea.vmem %s491_s7, 256 }
  0x42   : > { %p493_p13 = scmp.lt.s32.totalorder %s725_s28, %s491_s7  ;;  %p494_p3 = scmp.lt.s32.totalorder %s492_s24, %s486_s18 }
  0x43   : > { %p489_p7 = pneg %p488_p0 }
  0x44   : > { %p495_p6 = por %p494_p3, %p493_p13 }
  0x46   : > { %p496_p4 = pnand %p495_p6, %p489_p7 }
  0xc7   : > { %v233_v3 = vpop.xlane.xlu0 %232 }
  0xc8   : > { %v234_v4 = vmul.f32 0.03125, %v233_v3 }
  0xca   : > { %v235_v5 = vsub.f32 %v231_v0, %v234_v4 }
  0xcc   : > { %v239_v6 = vsel %vm238_vm0, %v235_v5, 0.0 }
  0xcd   : > { %v240_v7 = vmul.f32 %v239_v6, %v239_v6 }
  0xcf   : > { %241 = vadd.xlane.f32.xlu0 %v240_v7 }
 0x15c   : > { %v242_v8 = vpop.xlane.xlu0 %241 }
 0x15d   : > { %v243_v9 = vmul.f32 0.03125, %v242_v8 }
 0x15f   : > { %v244_v10 = vadd.f32 1e-05, %v243_v9 }
 0x161   : > { %454 = vrsqrt.f32 %v244_v10 }
 0x16b   : > { %v455_v11 = vpop.eup %454 }
 0x16c   : > { %v246_v13 = vmul.f32 %v455_v11, %v239_v6 }
 0x16e   : > { %v254_v15 = vmul.f32 %v386_v12, %v246_v13 }
 0x170   : > { %v262_v16 = vadd.f32 %v387_v14, %v254_v15 }
 0x172   : > { %263 = vst [vmem:[%s224_s23] sm:$0xff] %v262_v16 }
 0x173   : > { %499 = shalt.err (!%p496_p4)
}
 0x174   : > { %s500_s5 = scalar_lea.hbm %s723_s4, 128  ;;  %s504_s9 = scalar_lea.hbm %s775_s3, 256 }
 0x175   : > { %p501_p10 = scmp.ne.s32.totalorder %s723_s4, %s500_s5  ;;  %p505_p2 = scmp.lt.u32.totalorder %s723_s4, %s775_s3 }
 0x176   : > { %p506_p5 = scmp.lt.u32.totalorder %s504_s9, %s500_s5  ;;  %p508_p8 = scmp.lt.u32.totalorder %s500_s5, %s723_s4 }
 0x177   : > { %p502_p12 = pnand %p501_p10, %p784_p11 }
 0x178   : > { %p507_p9 = por %p506_p5, %p505_p2 }
 0x179   : > { %p503_p1 = pneg %p502_p12 }
 0x17a   : > { %p509_p0 = por %p508_p8, %p507_p9 }
 0x17c   : > { %p510_p7 = pnand %p509_p0, %p503_p1 }
 0x17e   : > { %513 = shalt.err (!%p510_p7)
}
 0x17f   : > { %394 = dma.vmem_to_hbm [thread:$0]  (%p784_p11), %s725_s28, 128, %s723_s4, %s265_s11  }
 0x180 PF: > { %s291_s21 = sand.u32 1, %s548_s12   ;;  %p785_p13 = scmp.ne.s32.totalorder %s780_s27, 0 }
 0x181   : > { %p786_p3 = scmp.ge.s32.totalorder %s568_s17, 2  ;;  %s292_s22 = scalar_lea.sflag [#allocation4], %s291_s21 }
 0x183   : > { %p401_p6 = pnand %p786_p3, %p785_p13 }
 0x185   : > { %543 = dma.done.wait (!%p401_p6), %s292_s22, 128  }
 0x186   : > { %545 = vsyncadd (!%p401_p6), %s292_s22, 4294967168  ;;  %s19_s17 = sadd.s32 1, %s568_s17   ;;  %s787_s12 = smov %s552_s13 }
 0x187   : > { %p16_p4 = scmp.ge.s32.totalorder %s19_s17, 4   ;;  %s788_s13 = smov %s556_s14 }
 0x188   : > { %s789_s14 = smov %s648_s26  ;;  %s790_s15 = smov %s564_s16 }
 0x189   : > { %s791_s16 = smov %s793_s20  ;;  %18 = sbr.rel (!%p16_p4) target bundleno = 6 (0x6), region = 83 }
 0x190   :  { %297 = vsyncpa [#allocation3], 1 }
 0x191   :  { %299 = vsyncpa [#allocation3 + $0x1], 1 }
 0x192   :  { %300 = vsyncpa [#allocation4], 1 }
 0x193   :  { %302 = vsyncpa [#allocation4 + $0x1], 1 }

</bundles_post_ra>
